<compile_context>
chip_gen: v6e
topology: v6e:2x2x1
jax: 0.10.0
libtpu: 0.0.40
codegen_flags: <defaults>
</compile_context>

<pallas_src>
import functools
import numpy as np
import jax
import jax.numpy as jnp
from jax import lax
from jax.experimental import pallas as pl
from jax.experimental.pallas import tpu as pltpu


def generate_spatial_batch(H, W):
    sb = np.zeros((H, W, 8), dtype=np.float32)
    for h in range(H):
        for w in range(W):
            xmin = w / W * 2 - 1
            xmax = (w + 1) / W * 2 - 1
            xctr = (xmin + xmax) / 2
            ymin = h / H * 2 - 1
            ymax = (h + 1) / H * 2 - 1
            yctr = (ymin + ymax) / 2
            sb[h, w, :] = [xmin, ymin, xmax, ymax, xctr, yctr, 1 / W, 1 / H]
    return sb.reshape(H * W, 8)


def _round_up(x, m):
    return (x + m - 1) // m * m


def _pad_last(x, target):
    pad = target - x.shape[-1]
    if pad == 0:
        return x
    cfg = [(0, 0)] * (x.ndim - 1) + [(0, pad)]
    return jnp.pad(x, cfg)


def _dep_context_kernel(pf_ref, hu_ref, huext_ref, cprojT_ref, wxT_ref,
                        out_ref,
                        p1t_scr, atthu_scr, xffmax_scr, m_scr,
                        *, d, hw, hwp, tr):
    """One (part, batch) pair; grid axis 2 walks TR-row blocks of the
    reduction (spatial) dimension of project2."""
    f32 = jnp.float32
    k = pl.program_id(2)
    nk = pl.num_programs(2)

    # ---- once per (part, batch): att_hu and project1^T ---------------------
    @pl.when(k == 0)
    def _init():
        hu = hu_ref[...].astype(f32)                          # (D, HWp)
        xff = jnp.sum(hu * hu, axis=0, keepdims=True)         # (1, HWp)
        mx = jnp.max(xff, axis=1, keepdims=True)              # (1, 1)
        xffmax_scr[...] = mx
        atthu_scr[...] = xff / mx                             # att_hu (by s)
        # project1^T = W_x^T @ p_fea + (coord @ W_s)^T  -> (D+8, HWp), lane-dense
        p1t_scr[...] = (jnp.dot(wxT_ref[...].astype(f32), pf_ref[...].astype(f32),
                                preferred_element_type=f32)
                        + cprojT_ref[...].astype(f32))
        m_scr[...] = jnp.full(m_scr.shape, -jnp.inf, f32)

    # ---- this block's rows of project2 (transposed: rows=t, lanes=s) ------
    # huext rows t: [hu(t, :D) | coord(t, :8)]                  (TR, D+8)
    huext = huext_ref[...].astype(f32)
    hu_part = huext[:, :d]                                      # (TR, D)
    xff_t = jnp.sum(hu_part * hu_part, axis=1, keepdims=True)   # (TR, 1)
    att_t = xff_t / xffmax_scr[...]                             # (TR, 1)
    col = lax.broadcasted_iota(jnp.int32, (1, d + 8), 1)
    scale = jnp.where(col < d, att_t, f32(1.0))                 # (TR, D+8)
    b_blk = huext * scale                                       # (TR, D+8)

    p2t_blk = jnp.dot(b_blk, p1t_scr[...],
                      preferred_element_type=f32)               # (TR, HWp)
    if hw != hwp:
        rows = lax.broadcasted_iota(jnp.int32, (tr, 1), 0) + k * tr
        p2t_blk = jnp.where(rows < hw, p2t_blk, -jnp.inf)
    m_scr[...] = jnp.maximum(m_scr[...],
                             jnp.max(p2t_blk, axis=0, keepdims=True))

    # ---- finalize: normalize and write the output once ---------------------
    @pl.when(k == nk - 1)
    def _finalize():
        att_ctx = m_scr[...]                                    # (1, HWp)
        if hw != hwp:
            lanes = lax.broadcasted_iota(jnp.int32, (1, hwp), 1)
            ctx_valid = jnp.where(lanes < hw, att_ctx, -jnp.inf)
        else:
            ctx_valid = att_ctx
        dep_att = att_ctx / jnp.max(ctx_valid, axis=1, keepdims=True)
        pf = pf_ref[...].astype(f32)
        out_ref[...] = (dep_att * pf * (1.0 - atthu_scr[...])).astype(out_ref.dtype)


def contexture_forward(xp_list, p_fea, W, coord, *, row_block=256):
    """Pallas equivalent of Contexture.forward: returns list of (N, C, H, W)."""
    parts = len(xp_list)
    n, c, h, w = p_fea.shape
    d = xp_list[0].shape[1]
    hw = h * w

    # Reduction row block: multiple of 128; spatial dim padded up to it.
    # (v7x: keep <= 512; v6e/v5e can raise to 1024+ via row_block.)
    tr = _round_up(min(int(row_block), _round_up(hw, 128)), 128)
    hwp = _round_up(hw, tr)
    nk = hwp // tr

    # Channel-major, lane-dense (padded) spatial layouts.
    pf = _pad_last(p_fea.reshape(n, c, hw), hwp)                     # (N, C, HWp)
    hu = jnp.stack([x.reshape(n, d, hw) for x in xp_list], axis=0)
    hu = _pad_last(hu.reshape(parts * n, d, hw), hwp)                # (P*N, D, HWp)

    coord = coord.astype(p_fea.dtype)
    coord_p = jnp.pad(coord, ((0, hwp - hw), (0, 0)))                # (HWp, 8)
    # Rows t of the fused B operand: [hu^T(t, :D) | coord(t, :8)]
    hu_ext = jnp.concatenate(
        [jnp.swapaxes(hu, 1, 2),
         jnp.broadcast_to(coord_p[None], (parts * n, hwp, 8))],
        axis=2)                                                      # (P*N, HWp, D+8)

    wxT = jnp.swapaxes(W[:c, :], 0, 1)                               # (D+8, C)
    cprojT = _pad_last(jnp.swapaxes(coord @ W[c:, :], 0, 1), hwp)    # (D+8, HWp)

    kernel = functools.partial(_dep_context_kernel, d=d, hw=hw, hwp=hwp, tr=tr)

    out = pl.pallas_call(
        kernel,
        out_shape=jax.ShapeDtypeStruct((parts * n, c, hwp), p_fea.dtype),
        grid_spec=pltpu.PrefetchScalarGridSpec(
            num_scalar_prefetch=0,
            grid=(parts, n, nk),
            in_specs=[
                pl.BlockSpec((None, c, hwp), lambda p, b, k: (b, 0, 0)),
                pl.BlockSpec((None, d, hwp), lambda p, b, k: (p * n + b, 0, 0)),
                pl.BlockSpec((None, tr, d + 8), lambda p, b, k: (p * n + b, k, 0)),
                pl.BlockSpec((d + 8, hwp), lambda p, b, k: (0, 0)),
                pl.BlockSpec((d + 8, c), lambda p, b, k: (0, 0)),
            ],
            out_specs=pl.BlockSpec((None, c, hwp),
                                   lambda p, b, k: (p * n + b, 0, 0)),
            scratch_shapes=[
                pltpu.VMEM((d + 8, hwp), jnp.float32),   # project1^T
                pltpu.VMEM((1, hwp), jnp.float32),       # att_hu (by s)
                pltpu.VMEM((1, 1), jnp.float32),         # max_s(xff_sum)
                pltpu.VMEM((1, hwp), jnp.float32),       # running max of project2
            ],
        ),
        compiler_params=pltpu.CompilerParams(
            dimension_semantics=("parallel", "parallel", "arbitrary"),
            vmem_limit_bytes=48 * 1024 * 1024),
    )(pf, hu, hu_ext, cprojT, wxT)

    out = out[..., :hw].reshape(parts, n, c, h, w)
    return [out[i] for i in range(parts)]


def _dep_context_ref(p_fea, hu, coord, W, hidden_dim):
    """Pure-JAX reference mirroring the PyTorch Dep_Context.forward."""
    n, c, h, w = p_fea.shape
    hw = h * w
    xff_sum = jnp.sum(hu * hu, axis=1, keepdims=True)
    att_hu = xff_sum / jnp.max(xff_sum, axis=(2, 3), keepdims=True)
    hus = att_hu * hu
    pf_flat = p_fea.reshape(n, c, hw).transpose(0, 2, 1)             # (n, hw, c)
    coord_b = jnp.broadcast_to(coord, (n, hw, 8))
    proj1 = jnp.einsum('nse,ed->nsd',
                       jnp.concatenate([pf_flat, coord_b], axis=2), W)
    B = jnp.concatenate([hus.reshape(n, hidden_dim, hw),
                         coord_b.transpose(0, 2, 1)], axis=1)
    proj2 = jnp.einsum('nsd,ndt->nst', proj1, B)
    att_ctx = jnp.max(proj2, axis=2).reshape(n, 1, h, w)
    dep_att = att_ctx / jnp.max(att_ctx, axis=(2, 3), keepdims=True)
    return dep_att * p_fea * (1.0 - att_hu)


if __name__ == "__main__":
    def _run_case(N, C, D, H, Wd, PARTS, row_block, case):
        key = jax.random.fold_in(jax.random.PRNGKey(0), case)
        k_p, k_w, *k_xp = jax.random.split(key, PARTS + 2)
        p_fea = jax.random.normal(k_p, (N, C, H, Wd), dtype=jnp.float32)
        xp_list = [jax.random.normal(k, (N, D, H, Wd), dtype=jnp.float32)
                   for k in k_xp]
        # Module initializes W = ones; perturb slightly (the parameter is
        # learnable) so the test is not degenerate.
        W = (jnp.ones((C + 8, D + 8), jnp.float32)
             + 0.05 * jax.random.normal(k_w, (C + 8, D + 8), jnp.float32))
        coord = jnp.asarray(generate_spatial_batch(H, Wd))           # (H*W, 8)

        outs = contexture_forward(xp_list, p_fea, W, coord, row_block=row_block)
        outs = [jax.block_until_ready(o) for o in outs]

        for i, xp in enumerate(xp_list):
            ref = _dep_context_ref(p_fea, xp, coord, W, D)
            np.testing.assert_allclose(np.asarray(outs[i]), np.asarray(ref),
                                       rtol=2e-3, atol=2e-3)

    # Small shape: single reduction block, padded lanes (64 -> 128) exercised.
    _run_case(N=2, C=32, D=10, H=8, Wd=8, PARTS=3, row_block=256, case=0)
    # Multi-block reduction path: HW = 256 with two 128-row blocks.
    _run_case(N=2, C=32, D=10, H=16, Wd=16, PARTS=2, row_block=128, case=1)

    print("KERNEL_OK")
</pallas_src>

<mosaic_0001>
module attributes {stable_mosaic.version = 11 : i64} {
  func.func @_dep_context_kernel(%arg0: i32, %arg1: i32, %arg2: i32, %arg3: memref<1x32x128xf32, #tpu.memory_space<vmem>>, %arg4: memref<1x10x128xf32, #tpu.memory_space<vmem>>, %arg5: memref<1x128x18xf32, #tpu.memory_space<vmem>>, %arg6: memref<18x128xf32, #tpu.memory_space<vmem>>, %arg7: memref<18x32xf32, #tpu.memory_space<vmem>>, %arg8: memref<1x32x128xf32, #tpu.memory_space<vmem>>, %arg9: memref<18x128xf32, #tpu.memory_space<vmem>>, %arg10: memref<1x128xf32, #tpu.memory_space<vmem>>, %arg11: memref<1x1xf32, #tpu.memory_space<vmem>>, %arg12: memref<1x128xf32, #tpu.memory_space<vmem>>) attributes {dimension_semantics = [#tpu.dimension_semantics<parallel>, #tpu.dimension_semantics<parallel>, #tpu.dimension_semantics<arbitrary>], iteration_bounds = array<i64: 3, 2, 1>, scalar_prefetch = 0 : i64, scratch_operands = 4 : i64, tpu.core_type = #tpu.core_type<tc>, window_params = [{transform_indices = @transform_0, window_bounds = array<i64: 1, 32, 128>}, {transform_indices = @transform_1, window_bounds = array<i64: 1, 10, 128>}, {transform_indices = @transform_2, window_bounds = array<i64: 1, 128, 18>}, {pipeline_mode = #tpu.pipeline_mode<synchronous>, transform_indices = @transform_3, window_bounds = array<i64: 18, 128>}, {pipeline_mode = #tpu.pipeline_mode<synchronous>, transform_indices = @transform_4, window_bounds = array<i64: 18, 32>}, {transform_indices = @transform_5, window_bounds = array<i64: 1, 32, 128>}]} {
    %c0_i32 = arith.constant 0 : i32
    %0 = arith.cmpi eq, %arg2, %c0_i32 : i32
    %1 = arith.extui %0 : i1 to i32
    %c0_i32_0 = arith.constant 0 : i32
    %2 = arith.cmpi ne, %1, %c0_i32_0 : i32
    scf.if %2 {
      %c0_17 = arith.constant 0 : index
      %c0_18 = arith.constant 0 : index
      %c0_19 = arith.constant 0 : index
      %42 = vector.load %arg4[%c0_17, %c0_18, %c0_19] : memref<1x10x128xf32, #tpu.memory_space<vmem>>, vector<1x10x128xf32>
      %43 = vector.shape_cast %42 : vector<1x10x128xf32> to vector<10x128xf32>
      %44 = arith.mulf %43, %43 : vector<10x128xf32>
      %cst_20 = arith.constant dense<0.000000e+00> : vector<128xf32>
      %45 = vector.multi_reduction <add>, %44, %cst_20 [0] : vector<10x128xf32> to vector<128xf32>
      %46 = vector.shape_cast %45 : vector<128xf32> to vector<1x128xf32>
      %cst_21 = arith.constant dense<0xFF800000> : vector<1xf32>
      %47 = vector.multi_reduction <maximumf>, %46, %cst_21 [1] : vector<1x128xf32> to vector<1xf32>
      %48 = vector.shape_cast %47 : vector<1xf32> to vector<1x1xf32>
      %c0_22 = arith.constant 0 : index
      %c0_23 = arith.constant 0 : index
      %49 = vector.load %arg11[%c0_22, %c0_23] : memref<1x1xf32, #tpu.memory_space<vmem>>, vector<1x1xf32>
      tpu.vector_store %arg11[%c0_22, %c0_23], %48 {strides = array<i32>} : memref<1x1xf32, #tpu.memory_space<vmem>>, vector<1x1xf32>,
      %50 = vector.broadcast %48 : vector<1x1xf32> to vector<1x128xf32>
      %51 = arith.divf %46, %50 : vector<1x128xf32>
      %c0_24 = arith.constant 0 : index
      %c0_25 = arith.constant 0 : index
      %52 = vector.load %arg10[%c0_24, %c0_25] : memref<1x128xf32, #tpu.memory_space<vmem>>, vector<1x128xf32>
      tpu.vector_store %arg10[%c0_24, %c0_25], %51 {strides = array<i32>} : memref<1x128xf32, #tpu.memory_space<vmem>>, vector<1x128xf32>,
      %c0_26 = arith.constant 0 : index
      %c0_27 = arith.constant 0 : index
      %53 = vector.load %arg7[%c0_26, %c0_27] : memref<18x32xf32, #tpu.memory_space<vmem>>, vector<18x32xf32>
      %c0_28 = arith.constant 0 : index
      %c0_29 = arith.constant 0 : index
      %c0_30 = arith.constant 0 : index
      %54 = vector.load %arg3[%c0_28, %c0_29, %c0_30] : memref<1x32x128xf32, #tpu.memory_space<vmem>>, vector<1x32x128xf32>
      %55 = vector.shape_cast %54 : vector<1x32x128xf32> to vector<32x128xf32>
      %cst_31 = arith.constant dense<0.000000e+00> : vector<18x128xf32>
      %56 = tpu.matmul %53, %55, %cst_31 {dimension_numbers = #tpu.dot_dimension_numbers<[1], [0], [0], [1], [0, 0, 1, 1], [], []>} : vector<18x32xf32>, vector<32x128xf32>, vector<18x128xf32> -> vector<18x128xf32>
      %c0_32 = arith.constant 0 : index
      %c0_33 = arith.constant 0 : index
      %57 = vector.load %arg6[%c0_32, %c0_33] : memref<18x128xf32, #tpu.memory_space<vmem>>, vector<18x128xf32>
      %58 = arith.addf %56, %57 : vector<18x128xf32>
      %c0_34 = arith.constant 0 : index
      %c0_35 = arith.constant 0 : index
      %59 = vector.load %arg9[%c0_34, %c0_35] : memref<18x128xf32, #tpu.memory_space<vmem>>, vector<18x128xf32>
      tpu.vector_store %arg9[%c0_34, %c0_35], %58 {strides = array<i32>} : memref<18x128xf32, #tpu.memory_space<vmem>>, vector<18x128xf32>,
      %cst_36 = arith.constant 0xFF800000 : f32
      %60 = vector.broadcast %cst_36 : f32 to vector<1x128xf32>
      %c0_37 = arith.constant 0 : index
      %c0_38 = arith.constant 0 : index
      %61 = vector.load %arg12[%c0_37, %c0_38] : memref<1x128xf32, #tpu.memory_space<vmem>>, vector<1x128xf32>
      tpu.vector_store %arg12[%c0_37, %c0_38], %60 {strides = array<i32>} : memref<1x128xf32, #tpu.memory_space<vmem>>, vector<1x128xf32>,
    } else {
    }
    %c0 = arith.constant 0 : index
    %c0_1 = arith.constant 0 : index
    %c0_2 = arith.constant 0 : index
    %3 = vector.load %arg5[%c0, %c0_1, %c0_2] : memref<1x128x18xf32, #tpu.memory_space<vmem>>, vector<1x128x18xf32>
    %4 = vector.shape_cast %3 : vector<1x128x18xf32> to vector<128x18xf32>
    %5 = vector.extract_strided_slice %4 {offsets = [0, 0], sizes = [128, 10], strides = [1, 1]} : vector<128x18xf32> to vector<128x10xf32>
    %6 = arith.mulf %5, %5 : vector<128x10xf32>
    %cst = arith.constant dense<0.000000e+00> : vector<128xf32>
    %7 = vector.multi_reduction <add>, %6, %cst [1] : vector<128x10xf32> to vector<128xf32>
    %8 = vector.shape_cast %7 : vector<128xf32> to vector<128x1xf32>
    %c0_3 = arith.constant 0 : index
    %c0_4 = arith.constant 0 : index
    %9 = vector.load %arg11[%c0_3, %c0_4] : memref<1x1xf32, #tpu.memory_space<vmem>>, vector<1x1xf32>
    %10 = vector.broadcast %9 : vector<1x1xf32> to vector<128x1xf32>
    %11 = arith.divf %8, %10 : vector<128x1xf32>
    %12 = tpu.iota {dimensions = array<i32: 1>} : vector<1x18xi32>
    %c10_i32 = arith.constant 10 : i32
    %13 = vector.broadcast %c10_i32 : i32 to vector<1x18xi32>
    %14 = arith.cmpi slt, %12, %13 : vector<1x18xi32>
    %cst_5 = arith.constant 1.000000e+00 : f32
    %15 = vector.shape_cast %14 : vector<1x18xi1> to vector<1x18xi1>
    %16 = vector.broadcast %15 : vector<1x18xi1> to vector<128x18xi1>
    %17 = vector.shape_cast %11 : vector<128x1xf32> to vector<128x1xf32>
    %18 = vector.broadcast %17 : vector<128x1xf32> to vector<128x18xf32>
    %19 = vector.broadcast %cst_5 : f32 to vector<128x18xf32>
    %20 = arith.select %16, %18, %19 : vector<128x18xi1>, vector<128x18xf32>
    %21 = arith.mulf %4, %20 : vector<128x18xf32>
    %c0_6 = arith.constant 0 : index
    %c0_7 = arith.constant 0 : index
    %22 = vector.load %arg9[%c0_6, %c0_7] : memref<18x128xf32, #tpu.memory_space<vmem>>, vector<18x128xf32>
    %cst_8 = arith.constant dense<0.000000e+00> : vector<128x128xf32>
    %23 = tpu.matmul %21, %22, %cst_8 {dimension_numbers = #tpu.dot_dimension_numbers<[1], [0], [0], [1], [0, 0, 1, 1], [], []>} : vector<128x18xf32>, vector<18x128xf32>, vector<128x128xf32> -> vector<128x128xf32>
    %24 = tpu.iota {dimensions = array<i32: 0>} : vector<128x1xi32>
    %c128_i32 = arith.constant 128 : i32
    %25 = arith.muli %arg2, %c128_i32 : i32
    %26 = vector.broadcast %25 : i32 to vector<128x1xi32>
    %27 = arith.addi %24, %26 : vector<128x1xi32>
    %c64_i32 = arith.constant 64 : i32
    %28 = vector.broadcast %c64_i32 : i32 to vector<128x1xi32>
    %29 = arith.cmpi slt, %27, %28 : vector<128x1xi32>
    %cst_9 = arith.constant 0xFF800000 : f32
    %30 = vector.shape_cast %29 : vector<128x1xi1> to vector<128x1xi1>
    %31 = vector.broadcast %30 : vector<128x1xi1> to vector<128x128xi1>
    %32 = vector.broadcast %cst_9 : f32 to vector<128x128xf32>
    %33 = arith.select %31, %23, %32 : vector<128x128xi1>, vector<128x128xf32>
    %c0_10 = arith.constant 0 : index
    %c0_11 = arith.constant 0 : index
    %34 = vector.load %arg12[%c0_10, %c0_11] : memref<1x128xf32, #tpu.memory_space<vmem>>, vector<1x128xf32>
    %cst_12 = arith.constant dense<0xFF800000> : vector<128xf32>
    %35 = vector.multi_reduction <maximumf>, %33, %cst_12 [0] : vector<128x128xf32> to vector<128xf32>
    %36 = vector.shape_cast %35 : vector<128xf32> to vector<1x128xf32>
    %37 = arith.maximumf %34, %36 : vector<1x128xf32>
    %c0_13 = arith.constant 0 : index
    %c0_14 = arith.constant 0 : index
    %38 = vector.load %arg12[%c0_13, %c0_14] : memref<1x128xf32, #tpu.memory_space<vmem>>, vector<1x128xf32>
    tpu.vector_store %arg12[%c0_13, %c0_14], %37 {strides = array<i32>} : memref<1x128xf32, #tpu.memory_space<vmem>>, vector<1x128xf32>,
    %c0_i32_15 = arith.constant 0 : i32
    %39 = arith.cmpi eq, %arg2, %c0_i32_15 : i32
    %40 = arith.extui %39 : i1 to i32
    %c0_i32_16 = arith.constant 0 : i32
    %41 = arith.cmpi ne, %40, %c0_i32_16 : i32
    scf.if %41 {
      %c0_17 = arith.constant 0 : index
      %c0_18 = arith.constant 0 : index
      %42 = vector.load %arg12[%c0_17, %c0_18] : memref<1x128xf32, #tpu.memory_space<vmem>>, vector<1x128xf32>
      %43 = tpu.iota {dimensions = array<i32: 1>} : vector<1x128xi32>
      %c64_i32_19 = arith.constant 64 : i32
      %44 = vector.broadcast %c64_i32_19 : i32 to vector<1x128xi32>
      %45 = arith.cmpi slt, %43, %44 : vector<1x128xi32>
      %cst_20 = arith.constant 0xFF800000 : f32
      %46 = vector.broadcast %cst_20 : f32 to vector<1x128xf32>
      %47 = arith.select %45, %42, %46 : vector<1x128xi1>, vector<1x128xf32>
      %cst_21 = arith.constant dense<0xFF800000> : vector<1xf32>
      %48 = vector.multi_reduction <maximumf>, %47, %cst_21 [1] : vector<1x128xf32> to vector<1xf32>
      %49 = vector.shape_cast %48 : vector<1xf32> to vector<1x1xf32>
      %50 = vector.broadcast %49 : vector<1x1xf32> to vector<1x128xf32>
      %51 = arith.divf %42, %50 : vector<1x128xf32>
      %c0_22 = arith.constant 0 : index
      %c0_23 = arith.constant 0 : index
      %c0_24 = arith.constant 0 : index
      %52 = vector.load %arg3[%c0_22, %c0_23, %c0_24] : memref<1x32x128xf32, #tpu.memory_space<vmem>>, vector<1x32x128xf32>
      %53 = vector.shape_cast %52 : vector<1x32x128xf32> to vector<32x128xf32>
      %54 = vector.broadcast %51 : vector<1x128xf32> to vector<32x128xf32>
      %55 = arith.mulf %54, %53 : vector<32x128xf32>
      %c0_25 = arith.constant 0 : index
      %c0_26 = arith.constant 0 : index
      %56 = vector.load %arg10[%c0_25, %c0_26] : memref<1x128xf32, #tpu.memory_space<vmem>>, vector<1x128xf32>
      %cst_27 = arith.constant 1.000000e+00 : f32
      %57 = vector.broadcast %cst_27 : f32 to vector<1x128xf32>
      %58 = arith.subf %57, %56 : vector<1x128xf32>
      %59 = vector.broadcast %58 : vector<1x128xf32> to vector<32x128xf32>
      %60 = arith.mulf %55, %59 : vector<32x128xf32>
      %c0_28 = arith.constant 0 : index
      %c0_29 = arith.constant 0 : index
      %c0_30 = arith.constant 0 : index
      %61 = vector.load %arg8[%c0_28, %c0_29, %c0_30] : memref<1x32x128xf32, #tpu.memory_space<vmem>>, vector<1x32x128xf32>
      %62 = vector.shape_cast %61 : vector<1x32x128xf32> to vector<32x128xf32>
      %63 = vector.shape_cast %60 : vector<32x128xf32> to vector<1x32x128xf32>
      tpu.vector_store %arg8[%c0_28, %c0_29, %c0_30], %63 {strides = array<i32>} : memref<1x32x128xf32, #tpu.memory_space<vmem>>, vector<1x32x128xf32>,
    } else {
    }
    return
  }
  func.func @transform_0(%arg0: i32, %arg1: i32, %arg2: i32) -> (i32, i32, i32) {
    %c0_i32 = arith.constant 0 : i32
    %c0_i32_0 = arith.constant 0 : i32
    %c0_i32_1 = arith.constant 0 : i32
    return %arg1, %c0_i32, %c0_i32_0 : i32, i32, i32
  }
  func.func @transform_1(%arg0: i32, %arg1: i32, %arg2: i32) -> (i32, i32, i32) {
    %c2_i32 = arith.constant 2 : i32
    %0 = arith.muli %arg0, %c2_i32 : i32
    %1 = arith.addi %0, %arg1 : i32
    %c0_i32 = arith.constant 0 : i32
    %c0_i32_0 = arith.constant 0 : i32
    %c0_i32_1 = arith.constant 0 : i32
    return %1, %c0_i32, %c0_i32_0 : i32, i32, i32
  }
  func.func @transform_2(%arg0: i32, %arg1: i32, %arg2: i32) -> (i32, i32, i32) {
    %c2_i32 = arith.constant 2 : i32
    %0 = arith.muli %arg0, %c2_i32 : i32
    %1 = arith.addi %0, %arg1 : i32
    %c0_i32 = arith.constant 0 : i32
    %c0_i32_0 = arith.constant 0 : i32
    return %1, %arg2, %c0_i32 : i32, i32, i32
  }
  func.func @transform_3(%arg0: i32, %arg1: i32, %arg2: i32) -> (i32, i32) {
    %c0_i32 = arith.constant 0 : i32
    %c0_i32_0 = arith.constant 0 : i32
    %c0_i32_1 = arith.constant 0 : i32
    return %c0_i32, %c0_i32_0 : i32, i32
  }
  func.func @transform_4(%arg0: i32, %arg1: i32, %arg2: i32) -> (i32, i32) {
    %c0_i32 = arith.constant 0 : i32
    %c0_i32_0 = arith.constant 0 : i32
    %c0_i32_1 = arith.constant 0 : i32
    return %c0_i32, %c0_i32_0 : i32, i32
  }
  func.func @transform_5(%arg0: i32, %arg1: i32, %arg2: i32) -> (i32, i32, i32) {
    %c2_i32 = arith.constant 2 : i32
    %0 = arith.muli %arg0, %c2_i32 : i32
    %1 = arith.addi %0, %arg1 : i32
    %c0_i32 = arith.constant 0 : i32
    %c0_i32_0 = arith.constant 0 : i32
    %c0_i32_1 = arith.constant 0 : i32
    return %1, %c0_i32, %c0_i32_0 : i32, i32, i32
  }
}

</mosaic_0001>

<bundles_post_ra>
// kernel: tpu_custom_call.1
= control target key start
LH: loop header
LB: loop body
LE: loop exit
PB: predicated region body
PF: predicated region fallthrough
CT: control target
= control target key end

     0   :  { %10 = vsyncpa [#allocation7], 0  ;;  %s1908_s0 = inlined_call_operand.vmem [shape: f32[2,32,128], index: 0, kind: input, shape index: {}]   ;;  %s1909_s1 = inlined_call_operand.vmem [shape: f32[6,10,128], index: 1, kind: input, shape index: {}]   ;;  %s1910_s2 = inlined_call_operand.vmem [shape: f32[6,128,18], index: 2, kind: input, shape index: {}]   ;;  %s1911_s3 = inlined_call_operand.vmem [shape: f32[18,128], index: 3, kind: input, shape index: {}]   ;;  %s1912_s4 = inlined_call_operand.vmem [shape: f32[18,32], index: 4, kind: input, shape index: {}]   ;;  %s1913_s5 = inlined_call_operand.hbm [shape: f32[6,32,128], index: 5, kind: output, shape index: {}]  }
   0x1   :  { %12 = vsyncpa [#allocation7 + $0x1], 0  ;;  %s1518_s18 = smov 0   ;;  %s1520_s19 = smov 0  }
   0x2   :  { %s1522_s20 = smov 0   ;;  %s1524_s21 = smov 0  }
   0x3   :  { %s1526_s22 = smov 0   ;;  %s1528_s23 = smov 0  }
   0x4   :  { %s1530_s24 = smov 0   ;;  %s1532_s25 = smov 0  }
   0x5 LB: > { %s1172_s26 = sadd.s32 4294967295, %s1479_s25   ;;  %s33_s27 = sadd.s32 1, %s1471_s23  ;;  %s1479_s25 = sphi %s1532_s25, %s18_s25   ;;  %s1475_s24 = sphi %s1530_s24, %s1922_s24   ;;  %s1471_s23 = sphi %s1528_s23, %s1921_s23   ;;  %s1467_s22 = sphi %s1526_s22, %s1920_s22   ;;  %s1463_s21 = sphi %s1524_s21, %s1919_s21   ;;  %s1459_s20 = sphi %s1522_s20, %s1918_s20   ;;  %s1455_s19 = sphi %s1520_s19, %s1917_s19   ;;  %s1451_s18 = sphi %s1518_s18, %s1916_s18  }
   0x6   : > { %s37_s28 = sadd.s32 1, %s1475_s24  ;;  %p35_p0 = scmp.ge.s32.totalorder %s33_s27, 2 }
   0x7   : > { %s1178_s29 = sshll.u32 %s1475_s24, 1  ;;  %s1173_s30 = sadd.s32 4294967294, %s1479_s25  }
   0x8   : > { %s172_s6 = sadd.s32 %s1471_s23, %s1178_s29  ;;  %s1924_s27 = smov (%p35_p0, %s33_s27), 0 }
   0x9   : > { %s1926_s28 = smov (!%p35_p0, %s37_s28), %s1475_s24  ;;  %p188_p1 = scmp.ne.s32.totalorder %s1459_s20, %s1455_s19 }
   0xa   : > { %p189_p2 = scmp.eq.s32.totalorder %s1172_s26, 5  ;;  %p39_p3 = scmp.ge.s32.totalorder %s1926_s28, 3 }
   0xb   : > { %p194_p4 = scmp.ne.s32.totalorder %s1455_s19, %s1451_s18  ;;  %p195_p6 = scmp.eq.s32.totalorder %s1173_s30, 5 }
   0xc   : > { %p1571_p5 = por %p189_p2, %p188_p1  ;;  %s1928_s28 = smov (%p39_p3, %s1926_s28), 0 }
   0xd   : > { %p1577_p7 = por %p195_p6, %p194_p4  ;;  %p1182_p8 = scmp.ge.s32.totalorder %s1479_s25, 1 }
   0xe   : > { %s1179_s9 = sshll.u32 %s1928_s28, 1  ;;  %p256_p9 = scmp.lt.s32.totalorder %s1479_s25, 7 }
   0xf   : > { %s174_s10 = sadd.s32 %s1179_s9, %s1924_s27  ;;  %s178_s11 = sadd.s32 1, %s1459_s20 }
  0x10   : > { %s175_s12 = ssub.s32 %s172_s6, %s174_s10  ;;  %p257_p10 = pnand %p1182_p8, %p256_p9 }
  0x11   : > { %p176_p11 = scmp.eq.s32.totalorder %s175_s12, 0  ;;  %s1186_s14 = sshll.u32 (!%p257_p10), %s1467_s22, 1 }
  0x12   : > { %260 = sbr.rel (%p257_p10) target bundleno = 758 (0x2f6), region = 40  ;;  %s1591_s15 = sadd.s32 (!%p257_p10), %s1463_s21, %s1186_s14 }
  0x13   : > { %s1587_s13 = scalar_select %p176_p11, %s1459_s20, %s178_s11  }
  0x14   : > { %p302_p12 = scmp.lt.s32.totalorder (!%p257_p10), %s1463_s21, 1  ;;  %p309_p13 = scmp.lt.s32.totalorder (!%p257_p10), %s1591_s15, 5 }
  0x17   : > { %v1481_v0 = vmov 0.0   ;;  %vm1482_vm0 = vmmov 0   ;;  %s310_s16 = scalar_select %p309_p13, %s1591_s15, 5  ;;  %vm340_vm1 = vcmask 1041408   ;;  %vm492_vm2 = vcmask 80896   ;;  %v356_v22 = vld [vmem:[%s1912_s4] sm:$0xff] }
  0x18   : > { %1249 = vmatprep.subr.mxu0 %v1481_v0  ;;  %1257 = vmatprep.mubr.msk.f32.mxu0 %vm1482_vm0, %v1481_v0  ;;  %s1930_s21 = smov (!%p302_p12, %s1463_s21), 1  ;;  %vm366_vm3 = vcmask 261120   ;;  %v357_v28 = vld [vmem:[%s1912_s4 + $0x8] sm:$0xff]  ;;  %v358_v34 = vld [vmem:[%s1912_s4 + $0x10] sm:$0x3]  ;;  %v1483_v44 = vmov 0  }
  0x19   : > { %s1220_s17 = sshll.u32 %s310_s16, 4  ;;  %s1221_s26 = sshll.u32 %s310_s16, 7  ;;  %1380 = vset.pattern.permute.xlu0 %v1483_v44  ;;  %1379 = vset.pattern.permute.xlu1 %v1483_v44  ;;  %vm351_vm4 = vcmask 0   ;;  %vm685_vm6 = vcmask 146432   ;;  %vm1012_vm8 = vcmask 1040384  }
  0x1a   : > { %s313_s22 = scalar_lea.vmem %s1909_s1, %s1220_s17  ;;  %s1606_s10 = scalar_lea.vmem %s1910_s2, %s1221_s26 }
  0x1b   : > { %v336_v1 = vld [vmem:[%s313_s22] sm:$0xff]  ;;  %v337_v2 = vld [vmem:[%s313_s22 + $0x8] sm:$0x3]  ;;  %s1219_s11 = sshll.u32 %s1930_s21, 5  ;;  %v1622_v9 = vld [vmem:[%s1606_s10 + $0x10] sm:$0xff]  ;;  %s1222_s17 = sshll.u32 %s1591_s15, 9 }
  0x1c   : > { %v1609_v3 = vld [vmem:[%s1606_s10 + $0x20] sm:$0xff]  ;;  %v338_v4 = vmul.f32 %v336_v1, %v336_v1  ;;  %v339_v5 = vmul.f32 %v337_v2, %v337_v2  ;;  %v1614_v7 = vld [vmem:[%s1606_s10 + $0x8] sm:$0xff]  ;;  %s306_s16 = scalar_lea.vmem %s1908_s0, %s1219_s11  ;;  %v478_v16 = vmul.f32 %v1622_v9, %v1622_v9  ;;  %v1638_v19 = vld [vmem:[%s1606_s10 + $0x18] sm:$0xff]  ;;  %s1847_s6 = scalar_lea.hbm %s1913_s5, %s1222_s17 }
  0x1d   : > { %v480_v6 = vmul.f32 %v1609_v3, %v1609_v3  ;;  %v477_v8 = vmul.f32 %v1614_v7, %v1614_v7  ;;  %v1626_v12 = vld [vmem:[%s306_s16 + $0x18] sm:$0xff]  ;;  %v1628_v13 = vld [vmem:[%s306_s16 + $0x10] sm:$0xff]  ;;  %v1635_v17 = vld [vmem:[%s306_s16 + $0x8] sm:$0xff]  ;;  %v479_v24 = vmul.f32 %v1638_v19, %v1638_v19  ;;  %s1485_s11 = smov [#allocation6]  }
  0x1e   : > { %v341_v10 = vsel %vm340_vm1, %v339_v5, 0.0  ;;  %1250 = vmatpush3.msra.mxu0 %v1626_v12  ;;  %v1642_v20 = vld [vmem:[%s306_s16] sm:$0xff]  ;;  %v499_v23 = vsel %vm492_vm2, %v478_v16, 0.0  ;;  %v1667_v33 = vld [vmem:[%s1606_s10 + $0x28] sm:$0xff]  ;;  %v1679_v37 = vld [vmem:[%s1606_s10 + $0x30] sm:$0xff]  ;;  %s1391_s12 = sshll.u32 %s1485_s11, 4  ;;  %s1392_s12 = int_to_ptr.vmem [resolvable:$false] %s1391_s12 }
  0x1f   : > { %v505_v11 = vsel %vm492_vm2, %v480_v6, 0.0  ;;  %v342_v14 = vadd.f32 %v341_v10, %v338_v4  ;;  %v496_v15 = vsel %vm492_vm2, %v477_v8, 0.0  ;;  %1251 = vmatprep.subr.mxu0 %v1481_v0  ;;  %v1655_v27 = vld [vmem:[%s1606_s10] sm:$0xff]  ;;  %v502_v29 = vsel %vm492_vm2, %v479_v24, 0.0  ;;  %v1685_v40 = vld [vmem:[%s1606_s10 + $0x38] sm:$0xff]  ;;  %v1701_v1 = vld [vmem:[%s1606_s10 + $0x48] sm:$0xff] }
  0x20   : > { %506 = vadd.xlane.f32.xlu1 %v505_v11  ;;  %1252 = vmatpush3.msra.mxu0 %v1628_v13  ;;  %v476_v31 = vmul.f32 %v1655_v27, %v1655_v27  ;;  %v481_v36 = vmul.f32 %v1667_v33, %v1667_v33  ;;  %v482_v39 = vmul.f32 %v1679_v37, %v1679_v37  ;;  %v363_v2 = vld [vmem:[%s1911_s3] sm:$0xff]  ;;  %v1710_v10 = vld [vmem:[%s1606_s10 + $0x58] sm:$0xff]  ;;  %v365_v24 = vld [vmem:[%s1911_s3 + $0x10] sm:$0x3]  ;;  %s1393_s14 = scalar_lea.vmem %s1392_s12, 1024 }
  0x21   : > { %v343_v18 = vrot.slane %v342_v14, 4  ;;  %1253 = vmatprep.subr.mxu0 %v1481_v0  ;;  %v483_v42 = vmul.f32 %v1685_v40, %v1685_v40  ;;  %v485_v6 = vmul.f32 %v1701_v1, %v1701_v1  ;;  %v1750_v44 = vld [vmem:[%s1606_s10 + $0x60] sm:$0xff] }
  0x22   : > { %1254 = vmatpush3.msra.mxu0 %v1635_v17  ;;  %v493_v35 = vsel %vm492_vm2, %v476_v31, 0.0  ;;  %v508_v38 = vsel %vm492_vm2, %v481_v36, 0.0  ;;  %v511_v41 = vsel %vm492_vm2, %v482_v39, 0.0 }
  0x23   : > { %v344_v21 = vadd.f32 %v343_v18, %v342_v14  ;;  %1255 = vmatprep.subr.mxu0 %v1481_v0  ;;  %v514_v43 = vsel %vm492_vm2, %v483_v42, 0.0  ;;  %v364_v14 = vld [vmem:[%s1911_s3 + $0x8] sm:$0xff]  ;;  %v520_v16 = vsel %vm492_vm2, %v485_v6, 0.0  ;;  %v487_v18 = vmul.f32 %v1710_v10, %v1710_v10 }
  0x24   : > { %497 = vadd.xlane.f32.xlu1 %v496_v15  ;;  %1256 = vmatpush3.msra.mxu0 %v1642_v20 }
  0x25   : > { %v345_v25 = vrot.slane %v344_v21, 2  ;;  %1258 = vmatmul.mubr.msk.f32.vlgmr.msra.gmra.mxu0 %vm366_vm3, %v356_v22  ;;  %v1719_v22 = vld [vmem:[%s1606_s10 + $0x68] sm:$0xff] }
  0x26   : > { %1260 = vmatprep.mubr.msk.f32.mxu0 %vm1482_vm0, %v1481_v0 }
  0x27   : > { %v346_v26 = vadd.f32 %v345_v25, %v344_v21 }
  0x28   : > { %500 = vadd.xlane.f32.xlu1 %v499_v23 }
  0x29   : > { %v347_v30 = vrot.slane %v346_v26, 1  ;;  %1261 = vmatmul.mubr.msk.f32.gmra.mxu0 %vm366_vm3, %v357_v28  ;;  %v489_v28 = vmul.f32 %v1719_v22, %v1719_v22 }
  0x2a   : > { %1263 = vmatprep.mubr.msk.f32.mxu0 %vm1482_vm0, %v1481_v0 }
  0x2b   : > { %v348_v32 = vadd.f32 %v347_v30, %v346_v26  ;;  %v526_v26 = vsel %vm492_vm2, %v487_v18, 0.0  ;;  %v1728_v30 = vld [vmem:[%s1606_s10 + $0x78] sm:$0xff] }
  0x2c   : > { %503 = vadd.xlane.f32.xlu1 %v502_v29 }
  0x2d   : > { %349 = vmax.xlane.f32.xlu0 %v348_v32  ;;  %1264 = vmatmul.mubr.msk.f32.gmra.mxu0 %vm366_vm3, %v358_v34  ;;  %v491_v34 = vmul.f32 %v1728_v30, %v1728_v30 }
  0x31   : > { %494 = vadd.xlane.f32.xlu0 %v493_v35  ;;  %v538_v35 = vsel %vm492_vm2, %v491_v34, 0.0 }
  0x35   : > { %509 = vadd.xlane.f32.xlu0 %v508_v38  ;;  %v1739_v38 = vld [vmem:[%s1606_s10 + $0x40] sm:$0xff] }
  0x36   : > { %v484_v39 = vmul.f32 %v1739_v38, %v1739_v38 }
  0x38   : > { %v517_v42 = vsel %vm492_vm2, %v484_v39, 0.0 }
  0x39   : > { %512 = vadd.xlane.f32.xlu0 %v511_v41  ;;  %v1744_v41 = vld [vmem:[%s1606_s10 + $0x50] sm:$0xff] }
  0x3d   : > { %515 = vadd.xlane.f32.xlu0 %v514_v43  ;;  %v486_v43 = vmul.f32 %v1744_v41, %v1744_v41 }
  0xa9   : > { %v507_v49 = vpop.xlane.xlu1 %506 }
  0xad   : > { %v498_v54 = vpop.xlane.xlu1 %497 }
  0xb1   : > { %v501_v58 = vpop.xlane.xlu1 %500 }
  0xb5   : > { %v504_v62 = vpop.xlane.xlu1 %503 }
  0xb6   : > { %v350_v45 = vpop.xlane.xlu0 %349 }
  0xb7   : > { %352 = vst.msk [vmem:[#allocation4] sm:$0x1] %vm351_vm4, %v350_v45  ;;  %1381 = vrcp.f32 %v350_v45  ;;  %v523_v45 = vsel %vm492_vm2, %v486_v43, 0.0 }
  0xba   : > { %v495_v51 = vpop.xlane.xlu0 %494 }
  0xbe   : > { %v1195_v46 = vld [vmem:[#allocation4] ss:$0 sm:$0xff]  ;;  %v510_v56 = vpop.xlane.xlu0 %509 }
  0xbf   : > { %1383 = vrcp.f32 %v1195_v46  ;;  %v488_v46 = vmul.f32 %v1750_v44, %v1750_v44 }
  0xc2   : > { %v513_v60 = vpop.xlane.xlu0 %512 }
  0xc4   : > { %v1382_v47 = vpop.eup %1381 }
  0xc5   : > { %v354_v48 = vmul.f32 %v1382_v47, %v348_v32  ;;  %v532_v32 = vsel %vm492_vm2, %v489_v28, 0.0  ;;  %v1756_v47 = vld [vmem:[%s1606_s10 + $0x70] sm:$0xff]  ;;  %s299_s10 = sand.u32 1, %s1455_s19  }
  0xc6   : > { %v516_v0 = vpop.xlane.xlu0 %515  ;;  %s1183_s21 = sshll.u32 %s299_s10, 5  ;;  %s1857_s15 = scalar_lea.sflag [#allocation7], %s299_s10 }
  0xc7   : > { %355 = vst [vmem:[#allocation3] sm:$0x1] %v354_v48  ;;  %v529_v48 = vsel %vm492_vm2, %v488_v46, 0.0  ;;  %s301_s26 = scalar_lea.vmem [#allocation6], %s1183_s21 }
  0xc8   : > { %s1064_s29 = sshll.u32 %s301_s26, 4  ;;  %s1853_s29 = int_to_ptr.vmem [resolvable:$true] %s1064_s29 }
  0xc9   : > { %s1387_s9 = scalar_lea.vmem %s1853_s29, 512  ;;  %p1394_p3 = scmp.lt.s32.totalorder %s1853_s29, %s1392_s12 }
  0xca   : > { %p1388_p0 = scmp.ne.s32.totalorder %s1853_s29, %s1387_s9  ;;  %p1395_p4 = scmp.lt.s32.totalorder %s1393_s14, %s1387_s9 }
  0xcc   : > { %v1691_v50 = vpop.eup %1383  ;;  %p1389_p1 = pnand %p1388_p0, %p1571_p5  ;;  %p1396_p6 = por %p1395_p4, %p1394_p3 }
  0xcd   : > { %v553_v52 = vmul.f32 %v1691_v50, %v507_v49  ;;  %v549_v53 = vmul.f32 %v1691_v50, %v495_v51  ;;  %v550_v55 = vmul.f32 %v1691_v50, %v498_v54  ;;  %v554_v57 = vmul.f32 %v1691_v50, %v510_v56 }
  0xce   : > { %v551_v59 = vmul.f32 %v1691_v50, %v501_v58  ;;  %v555_v61 = vmul.f32 %v1691_v50, %v513_v60  ;;  %v552_v63 = vmul.f32 %v1691_v50, %v504_v62  ;;  %v556_v4 = vmul.f32 %v1691_v50, %v516_v0  ;;  %p1390_p2 = pneg %p1389_p1 }
  0xcf   : > { %592 = vperm.xlu0 %1380, %v553_v52   ;;  %572 = vperm.xlu1 %1379, %v549_v53   ;;  %v490_v49 = vmul.f32 %v1756_v47, %v1756_v47  ;;  %v565_v52 = vlaneseq }
  0xd0   : > { %p1397_p8 = pnand %p1396_p6, %p1390_p2 }
  0xd1   : > { %v535_v51 = vsel %vm492_vm2, %v490_v49, 0.0  ;;  %v1763_v53 = vand.u32 127, %v565_v52 }
  0xd3   : > { %577 = vperm.xlu1 %1379, %v550_v55   ;;  %vm567_vm5 = vcmp.lt.s32.totalorder %v1763_v53, 10  ;;  %vm1010_vm7 = vcmp.lt.s32.totalorder %v1763_v53, 64 }
  0xd7   : > { %597 = vperm.xlu1 %1379, %v554_v57  }
  0xdb   : > { %582 = vperm.xlu1 %1379, %v551_v59  }
  0xdf   : > { %602 = vperm.xlu1 %1379, %v555_v61  }
  0xe3   : > { %587 = vperm.xlu1 %1379, %v552_v63  }
  0xe5   : > { %v442_v5 = vpop.f32.mrf.mxu0 }
  0xe6   : > { %v443_v8 = vadd.f32 %v442_v5, %v363_v2 }
  0xe7   : > { %607 = vperm.xlu1 %1379, %v556_v4   ;;  %v1259_v11 = vpop.f32.mrf.mxu0 }
  0xe9   : > { %v447_v15 = vpop.f32.mrf.mxu0 }
  0xea   : > { %v448_v21 = vadd.f32 %v447_v15, %v364_v14 }
  0xeb   : > { %v1262_v23 = vpop.f32.mrf.mxu0 }
  0xed   : > { %v452_v25 = vpop.f32.mrf.mxu0 }
  0xee   : > { %521 = vadd.xlane.f32.xlu0 %v520_v16  ;;  %v453_v29 = vadd.f32 %v452_v25, %v365_v24 }
  0xef   : > { %v1265_v31 = vpop.f32.mrf.mxu0 }
  0xf0   : > { %458 = vst [vmem:[#allocation2 + $0x8] sm:$0x3] %v453_v29 }
  0xf2   : > { %527 = vadd.xlane.f32.xlu0 %v526_v26 }
  0xf6   : > { %533 = vadd.xlane.f32.xlu0 %v532_v32 }
  0xf7   : > { %v684_v36 = vld [vmem:[#allocation2 + $0x8] sm:$0x3] }
  0xf8   : > { %1266 = vmatprep.subr.msk.mxu0 %vm340_vm1, %v684_v36  ;;  %1296 = vmatprep.subr.msk.mxu1 %vm340_vm1, %v684_v36 }
  0xf9   : > { %1267 = vmatpush3.msk.msra.mxu0 %vm340_vm1, %v684_v36  ;;  %1299 = vmatpush3.msk.msra.mxu1 %vm340_vm1, %v684_v36  ;;  %v1484_v36 = vmov -inf  }
  0xfa   : > { %539 = vadd.xlane.f32.xlu0 %v538_v35  ;;  %1268 = vmatprep.subr.mxu0 %v448_v21  ;;  %459 = vst [vmem:[#allocation5] sm:$0x1] %v1484_v36 }
  0xfb   : > { %1297 = vmatprep.subr.mxu1 %v448_v21  ;;  %1269 = vmatpush3.msra.mxu0 %v448_v21 }
  0xfc   : > { %1300 = vmatpush3.msra.mxu1 %v448_v21  ;;  %1270 = vmatprep.subr.mxu0 %v443_v8 }
  0xfd   : > { %1298 = vmatprep.subr.mxu1 %v443_v8  ;;  %1271 = vmatpush3.msra.mxu0 %v443_v8 }
  0xfe   : > { %1301 = vmatpush3.msra.mxu1 %v443_v8 }
 0x10b   : > { %518 = vadd.xlane.f32.xlu1 %v517_v42 }
 0x10f   : > { %524 = vadd.xlane.f32.xlu1 %v523_v45 }
 0x113   : > { %530 = vadd.xlane.f32.xlu1 %v529_v48 }
 0x117   : > { %536 = vadd.xlane.f32.xlu1 %v535_v51 }
 0x14a   : > { %v573_v54 = vpop.permute.xlu1 %572  ;;  %v593_v55 = vpop.permute.xlu0 %592 }
 0x14b   : > { %v650_v56 = vsel %vm567_vm5, %v573_v54, 1.0  ;;  %v654_v57 = vsel %vm567_vm5, %v593_v55, 1.0 }
 0x14c   : > { %v666_v58 = vmul.f32 %v650_v56, %v1655_v27  ;;  %v670_v59 = vmul.f32 %v654_v57, %v1609_v3 }
 0x14e   : > { %v578_v60 = vpop.permute.xlu1 %577  ;;  %1272 = vmatprep.mubr.msk.f32.mxu0 %vm685_vm6, %v666_v58  ;;  %1278 = vmatprep.mubr.msk.f32.mxu1 %vm685_vm6, %v670_v59 }
 0x14f   : > { %v651_v61 = vsel %vm567_vm5, %v578_v60, 1.0 }
 0x150   : > { %v667_v62 = vmul.f32 %v651_v61, %v1614_v7 }
 0x152   : > { %v598_v63 = vpop.permute.xlu1 %597  ;;  %1273 = vmatmul.mubr.msk.f32.vlgmr.msra.gmra.mxu0 %vm685_vm6, %v667_v62 }
 0x153   : > { %v655_v0 = vsel %vm567_vm5, %v598_v63, 1.0 }
 0x154   : > { %v671_v27 = vmul.f32 %v655_v0, %v1667_v33 }
 0x156   : > { %v583_v2 = vpop.permute.xlu1 %582  ;;  %1279 = vmatmul.mubr.msk.f32.vlgmr.msra.gmra.mxu1 %vm685_vm6, %v671_v27 }
 0x157   : > { %v652_v3 = vsel %vm567_vm5, %v583_v2, 1.0 }
 0x158   : > { %v668_v4 = vmul.f32 %v652_v3, %v1622_v9 }
 0x15a   : > { %v603_v5 = vpop.permute.xlu1 %602  ;;  %1275 = vmatprep.mubr.msk.f32.mxu0 %vm685_vm6, %v668_v4 }
 0x15b   : > { %v656_v7 = vsel %vm567_vm5, %v603_v5, 1.0 }
 0x15c   : > { %v672_v6 = vmul.f32 %v656_v7, %v1679_v37 }
 0x15e   : > { %v588_v8 = vpop.permute.xlu1 %587  ;;  %1281 = vmatprep.mubr.msk.f32.mxu1 %vm685_vm6, %v672_v6 }
 0x15f   : > { %v653_v33 = vsel %vm567_vm5, %v588_v8, 1.0 }
 0x160   : > { %v669_v11 = vmul.f32 %v653_v33, %v1638_v19 }
 0x162   : > { %v608_v14 = vpop.permute.xlu1 %607  ;;  %1276 = vmatmul.mubr.msk.f32.gmra.mxu0 %vm685_vm6, %v669_v11 }
 0x163   : > { %v657_v9 = vsel %vm567_vm5, %v608_v14, 1.0 }
 0x164   : > { %v673_v15 = vmul.f32 %v657_v9, %v1685_v40 }
 0x166   : > { %1282 = vmatmul.mubr.msk.f32.gmra.mxu1 %vm685_vm6, %v673_v15 }
 0x177   : > { %v522_v16 = vpop.xlane.xlu0 %521 }
 0x178   : > { %v558_v37 = vmul.f32 %v1691_v50, %v522_v16 }
 0x17a   : > { %617 = vperm.xlu0 %1380, %v558_v37  }
 0x17b   : > { %v528_v23 = vpop.xlane.xlu0 %527 }
 0x17c   : > { %v560_v28 = vmul.f32 %v1691_v50, %v528_v23 }
 0x17f   : > { %v534_v25 = vpop.xlane.xlu0 %533 }
 0x180   : > { %v562_v31 = vmul.f32 %v1691_v50, %v534_v25 }
 0x183   : > { %v540_v34 = vpop.xlane.xlu0 %539 }
 0x184   : > { %v564_v35 = vmul.f32 %v1691_v50, %v540_v34 }
 0x194   : > { %v519_v18 = vpop.xlane.xlu1 %518 }
 0x195   : > { %v557_v21 = vmul.f32 %v1691_v50, %v519_v18 }
 0x197   : > { %612 = vperm.xlu1 %1379, %v557_v21  }
 0x198   : > { %v525_v19 = vpop.xlane.xlu1 %524 }
 0x199   : > { %v559_v24 = vmul.f32 %v1691_v50, %v525_v19 }
 0x19b   : > { %622 = vperm.xlu1 %1379, %v559_v24  }
 0x19c   : > { %v531_v26 = vpop.xlane.xlu1 %530 }
 0x19d   : > { %v561_v40 = vmul.f32 %v1691_v50, %v531_v26 }
 0x19f   : > { %632 = vperm.xlu0 %1380, %v561_v40   ;;  %627 = vperm.xlu1 %1379, %v560_v28  }
 0x1a0   : > { %v537_v29 = vpop.xlane.xlu1 %536 }
 0x1a1   : > { %v563_v32 = vmul.f32 %v1691_v50, %v537_v29 }
 0x1a3   : > { %642 = vperm.xlu0 %1380, %v563_v32   ;;  %637 = vperm.xlu1 %1379, %v562_v31   ;;  %v1024_v31 = vshrl.u32 %v565_v52, 7  ;;  %v1032_v32 = vld [vmem:[#allocation3] sm:$0x1] }
 0x1a4   : > { %v1033_v36 = vsub.f32 1.0, %v1032_v32 }
 0x1a7   : > { %647 = vperm.xlu1 %1379, %v564_v35   ;;  %v1025_v35 = vsub.s32 0, %v1024_v31 }
 0x1f5   : > { %v618_v39 = vpop.permute.xlu0 %617 }
 0x1f6   : > { %v659_v42 = vsel %vm567_vm5, %v618_v39, 1.0 }
 0x1f7   : > { %v675_v48 = vmul.f32 %v659_v42, %v1701_v1 }
 0x212   : > { %v613_v43 = vpop.permute.xlu1 %612  ;;  %v1274_v58 = vpop.f32.mrf.mxu0 }
 0x213   : > { %v658_v45 = vsel %vm567_vm5, %v613_v43, 1.0 }
 0x214   : > { %v674_v46 = vmul.f32 %v658_v45, %v1739_v38  ;;  %v804_v0 = vpop.f32.mrf.mxu0  ;;  %v1038_v45 = vrot.slane %v1033_v36, %v1025_v35 }
 0x216   : > { %v623_v49 = vpop.permute.xlu1 %622  ;;  %1284 = vmatprep.mubr.msk.f32.mxu1 %vm685_vm6, %v674_v46  ;;  %v1280_v62 = vpop.f32.mrf.mxu1 }
 0x217   : > { %v660_v50 = vsel %vm567_vm5, %v623_v49, 1.0  ;;  %1285 = vmatmul.mubr.msk.f32.gmra.mxu1 %vm685_vm6, %v675_v48 }
 0x218   : > { %v676_v51 = vmul.f32 %v660_v50, %v1744_v41  ;;  %v824_v2 = vpop.f32.mrf.mxu1 }
 0x219   : > { %v983_v7 = vmax.f32 %v804_v0, %v824_v2 }
 0x21a   : > { %v628_v54 = vpop.permute.xlu1 %627  ;;  %v633_v55 = vpop.permute.xlu0 %632  ;;  %1287 = vmatprep.mubr.msk.f32.mxu1 %vm685_vm6, %v676_v51 }
 0x21b   : > { %v661_v56 = vsel %vm567_vm5, %v628_v54, 1.0  ;;  %v662_v1 = vsel %vm567_vm5, %v633_v55, 1.0 }
 0x21c   : > { %v677_v38 = vmul.f32 %v661_v56, %v1710_v10  ;;  %v678_v57 = vmul.f32 %v662_v1, %v1750_v44 }
 0x21e   : > { %v638_v59 = vpop.permute.xlu1 %637  ;;  %v643_v60 = vpop.permute.xlu0 %642  ;;  %1288 = vmatmul.mubr.msk.f32.gmra.mxu1 %vm685_vm6, %v677_v38 }
 0x21f   : > { %v663_v41 = vsel %vm567_vm5, %v638_v59, 1.0  ;;  %v664_v61 = vsel %vm567_vm5, %v643_v60, 1.0  ;;  %1290 = vmatprep.mubr.msk.f32.mxu1 %vm685_vm6, %v678_v57 }
 0x220   : > { %v679_v63 = vmul.f32 %v663_v41, %v1719_v22  ;;  %v680_v10 = vmul.f32 %v664_v61, %v1756_v47  ;;  %v984_v47 = vmax.f32 %v1274_v58, %v1280_v62 }
 0x222   : > { %v648_v44 = vpop.permute.xlu1 %647  ;;  %1291 = vmatmul.mubr.msk.f32.gmra.mxu1 %vm685_vm6, %v679_v63  ;;  %v1277_v4 = vpop.f32.mrf.mxu0  ;;  %v995_v11 = vmax.f32 %v983_v7, %v984_v47 }
 0x223   : > { %v665_v27 = vsel %vm567_vm5, %v648_v44, 1.0  ;;  %1293 = vmatprep.mubr.msk.f32.mxu1 %vm685_vm6, %v680_v10 }
 0x224   : > { %v681_v3 = vmul.f32 %v665_v27, %v1728_v30  ;;  %v814_v22 = vpop.f32.mrf.mxu0  ;;  %v982_v30 = vld [vmem:[#allocation5] sm:$0x1] }
 0x226   : > { %v1283_v5 = vpop.f32.mrf.mxu1  ;;  %1294 = vmatmul.mubr.msk.f32.gmra.mxu1 %vm685_vm6, %v681_v3 }
 0x227   : > { %v986_v8 = vmax.f32 %v1277_v4, %v1283_v5 }
 0x228   : > { %v834_v6 = vpop.f32.mrf.mxu1 }
 0x229   : > { %v985_v33 = vmax.f32 %v814_v22, %v834_v6 }
 0x22b   : > { %v996_v14 = vmax.f32 %v985_v33, %v986_v8 }
 0x22d   : > { %v997_v9 = vmax.f32 %v995_v11, %v996_v14 }
 0x22f   : > { %v998_v15 = vrot.slane %v997_v9, 4 }
 0x231   : > { %v999_v16 = vmax.f32 %v997_v9, %v998_v15 }
 0x233   : > { %v1000_v37 = vrot.slane %v999_v16, 2 }
 0x235   : > { %v1001_v18 = vmax.f32 %v999_v16, %v1000_v37 }
 0x237   : > { %v1002_v21 = vrot.slane %v1001_v18, 1 }
 0x239   : > { %v1003_v23 = vmax.f32 %v1001_v18, %v1002_v21 }
 0x23b   : > { %v1004_v19 = vmax.f32 %v982_v30, %v1003_v23 }
 0x23d   : > { %1005 = vst [vmem:[#allocation5] sm:$0x1] %v1004_v19 }
 0x244   : > { %v1009_v24 = vld [vmem:[#allocation5] sm:$0x1] }
 0x245   : > { %v1011_v25 = vsel %vm1010_vm7, %v1009_v24, -inf }
 0x246   : > { %v1013_v26 = vsel %vm1012_vm8, %v1011_v25, -inf }
 0x247   : > { %1014 = vmax.xlane.f32.xlu0 %v1013_v26 }
 0x2d0   : > { %v1015_v28 = vpop.xlane.xlu0 %1014 }
 0x2d1   : > { %1385 = vrcp.f32 %v1015_v28 }
 0x2d7   : > { %v1286_v40 = vpop.f32.mrf.mxu1 }
 0x2d9   : > { %v844_v29 = vpop.f32.mrf.mxu1 }
 0x2de   : > { %v1386_v34 = vpop.eup %1385  ;;  %v1289_v53 = vpop.f32.mrf.mxu1 }
 0x2df   : > { %v1017_v39 = vmul.f32 %v1386_v34, %v1009_v24 }
 0x2e0   : > { %v854_v42 = vpop.f32.mrf.mxu1 }
 0x2e1   : > { %v1026_v43 = vrot.slane %v1017_v39, %v1025_v35 }
 0x2e2   : > { %v1292_v46 = vpop.f32.mrf.mxu1 }
 0x2e3   : > { %v1028_v52 = vmul.f32 %v1026_v43, %v1642_v20  ;;  %v1029_v48 = vmul.f32 %v1026_v43, %v1635_v17  ;;  %v1030_v49 = vmul.f32 %v1026_v43, %v1628_v13  ;;  %v1031_v50 = vmul.f32 %v1026_v43, %v1626_v12 }
 0x2e4   : > { %v864_v51 = vpop.f32.mrf.mxu1 }
 0x2e5   : > { %v1040_v54 = vmul.f32 %v1038_v45, %v1028_v52  ;;  %v1041_v55 = vmul.f32 %v1038_v45, %v1029_v48  ;;  %v1042_v56 = vmul.f32 %v1038_v45, %v1030_v49  ;;  %v1043_v1 = vmul.f32 %v1038_v45, %v1031_v50 }
 0x2e6   : > { %v1295_v38 = vpop.f32.mrf.mxu1 }
 0x2e7   : > { %1044 = vst [vmem:[%s301_s26] sm:$0xff] %v1040_v54  ;;  %1045 = vst [vmem:[%s301_s26 + $0x8] sm:$0xff] %v1041_v55 }
 0x2e8   : > { %1046 = vst [vmem:[%s301_s26 + $0x10] sm:$0xff] %v1042_v56  ;;  %1047 = vst [vmem:[%s301_s26 + $0x18] sm:$0xff] %v1043_v1  ;;  %v874_v17 = vpop.f32.mrf.mxu1 }
 0x2e9   : > { %1400 = shalt.err (!%p1397_p8)
}
 0x2ea   : > { %s1401_s16 = scalar_lea.hbm %s1847_s6, 512  ;;  %s1405_s17 = scalar_lea.hbm %s1913_s5, 3072 }
 0x2eb   : > { %p1402_p9 = scmp.ne.s32.totalorder %s1847_s6, %s1401_s16  ;;  %p1406_p12 = scmp.lt.s32.totalorder %s1847_s6, %s1913_s5 }
 0x2ec   : > { %p1407_p13 = scmp.lt.s32.totalorder %s1405_s17, %s1401_s16 }
 0x2ed   : > { %p1403_p10 = pnand %p1402_p9, %p1571_p5 }
 0x2ee   : > { %p1408_p0 = por %p1407_p13, %p1406_p12 }
 0x2ef   : > { %p1404_p11 = pneg %p1403_p10 }
 0x2f1   : > { %p1409_p1 = pnand %p1408_p0, %p1404_p11 }
 0x2f3   : > { %1412 = shalt.err (!%p1409_p1)
}
 0x2f4   : > { %s1486_s22 = smov 128   ;;  %s1487_s9 = smov 8  }
 0x2f5   : > { %1302 = dma.vmem_to_hbm [thread:$0]  (%p1571_p5), %s1853_s29, 512, %s1847_s6, %s1857_s15, %s1486_s22, %s1486_s22, %s1487_s9  }
 0x2f6 PF: > { %p1308_p2 = scmp.ge.s32.totalorder %s1479_s25, 2  ;;  %s1079_s11 = sand.u32 1, %s1451_s18  }
 0x2f7   : > { %s1080_s12 = scalar_lea.sflag [#allocation7], %s1079_s11 }
 0x2f8   : > { %p1305_p3 = pnand %p1308_p2, %p1577_p7 }
 0x2fa   : > { %p1306_p4 = pneg %p1305_p3 }
 0x2fc   : > { %1446 = dma.done.wait (%p1306_p4), %s1080_s12, 512  }
 0x2fd   : > { %1448 = vsyncadd (%p1306_p4), %s1080_s12, 4294966784  ;;  %s18_s25 = sadd.s32 1, %s1479_s25   ;;  %s1916_s18 = smov %s1455_s19 }
 0x2fe   : > { %p15_p6 = scmp.ge.s32.totalorder %s18_s25, 8   ;;  %s1917_s19 = smov %s1459_s20 }
 0x2ff   : > { %s1918_s20 = smov %s1587_s13  ;;  %s1919_s21 = smov %s1471_s23 }
 0x300   : > { %s1920_s22 = smov %s1475_s24  ;;  %s1921_s23 = smov %s1924_s27 }
 0x301   : > { %s1922_s24 = smov %s1928_s28  ;;  %17 = sbr.rel (!%p15_p6) target bundleno = 5 (0x5), region = 89 }
 0x306   :  { %1085 = vsyncpa [#allocation7], 1 }
 0x307   :  { %1087 = vsyncpa [#allocation7 + $0x1], 1 }

</bundles_post_ra>
